<compile_context>
chip_gen: v7x
topology: tpu7x:2x2x1
jax: 0.10.0
libtpu: 0.0.40
codegen_flags: <defaults>
</compile_context>

<pallas_src>
import jax
import jax.numpy as jnp
from jax.experimental import pallas as pl
from jax.experimental.pallas import tpu as pltpu


LANE = 128                # fc3 weight padded to a full lane dim for the MXU pass
MAX_TILE_B = 4096         # batch-tile rows; amortizes the ~0.35us/step overhead
MEGACORE_MIN_ROWS = 1024  # above this, force >=2 tiles so v7x's 2 TCs both work


def _round_up(x, m):
    return ((x + m - 1) // m) * m


def mlp_kernel(x_ref, w1_ref, b1_ref, w2_ref, b2_ref, w3_ref, b3_ref, o_ref):
    """Fused fc1->ReLU->fc2->ReLU->fc3->sigmoid for one batch tile.

    x_ref is f32; the bf16 cast for the MXU happens here (cheap VPU cast) so the
    wrapper never materializes a bf16 copy of x in HBM. Bias/ReLU/sigmoid stay
    in f32 (v5e has no bf16 VPU/EUP path).
    """
    x = x_ref[...].astype(w1_ref.dtype)                       # f32 -> bf16 in-register

    h1 = jnp.dot(x, w1_ref[...], preferred_element_type=jnp.float32) + b1_ref[...]
    h1 = jnp.maximum(h1, 0.0).astype(w2_ref.dtype)

    h2 = jnp.dot(h1, w2_ref[...], preferred_element_type=jnp.float32) + b2_ref[...]
    h2 = jnp.maximum(h2, 0.0).astype(w3_ref.dtype)

    # fc3: MXU pass against the (hidden, 128) zero-padded head; only column 0 is
    # real. Bias-add + sigmoid + store are restricted to that single column.
    logits = jnp.dot(h2, w3_ref[...], preferred_element_type=jnp.float32)
    o_ref[...] = jax.nn.sigmoid(logits[:, :1] + b3_ref[...])


def mlp_forward(x, w1, b1, w2, b2, w3, b3, *, compute_dtype=jnp.bfloat16):
    batch, in_dim = x.shape
    hidden = w1.shape[1]
    out_dim = w3.shape[1]  # == 1 for this module

    # ---- weight / bias prep (tiny arrays, built once) ------------------------
    w1c = w1.astype(compute_dtype)
    w2c = w2.astype(compute_dtype)
    w3p = jnp.zeros((hidden, LANE), compute_dtype).at[:, :out_dim].set(
        w3.astype(compute_dtype))
    b1c = b1.reshape(1, hidden).astype(jnp.float32)
    b2c = b2.reshape(1, hidden).astype(jnp.float32)
    b3c = b3.reshape(1, out_dim).astype(jnp.float32)

    # ---- batch tiling ---------------------------------------------------------
    # Big tiles (overhead amortization), at least 2 tiles for large batches
    # (v7x megacore), and padding limited to <8 rows per tile. x itself is NOT
    # padded: the last block's out-of-bounds rows are masked by Pallas and the
    # corresponding (garbage, row-independent) output rows are sliced off below.
    n_tiles = max(1, pl.cdiv(batch, MAX_TILE_B))
    if batch >= MEGACORE_MIN_ROWS:
        n_tiles = max(n_tiles, 2)
    tb = _round_up(pl.cdiv(batch, n_tiles), 8)
    padded_batch = n_tiles * tb

    out = pl.pallas_call(
        mlp_kernel,
        out_shape=jax.ShapeDtypeStruct((padded_batch, out_dim), jnp.float32),
        grid=(n_tiles,),
        in_specs=[
            pl.BlockSpec((tb, in_dim), lambda i: (i, 0)),       # x: streamed (f32)
            pl.BlockSpec((in_dim, hidden), lambda i: (0, 0)),   # w1: resident
            pl.BlockSpec((1, hidden), lambda i: (0, 0)),        # b1: resident
            pl.BlockSpec((hidden, hidden), lambda i: (0, 0)),   # w2: resident
            pl.BlockSpec((1, hidden), lambda i: (0, 0)),        # b2: resident
            pl.BlockSpec((hidden, LANE), lambda i: (0, 0)),     # w3 (padded): resident
            pl.BlockSpec((1, out_dim), lambda i: (0, 0)),       # b3: resident
        ],
        out_specs=pl.BlockSpec((tb, out_dim), lambda i: (i, 0)),  # 1-wide output
        compiler_params=pltpu.CompilerParams(
            dimension_semantics=("parallel",),      # megacore split on v7x
        ),
    )(x, w1c, b1c, w2c, b2c, w3p, b3c)

    return out if padded_batch == batch else out[:batch]


def mlp_reference_bf16(x, w1, b1, w2, b2, w3, b3, compute_dtype=jnp.bfloat16):
    """Pure-JAX reference following the same bf16-operand / f32-accum path."""
    xd = x.astype(compute_dtype)
    h1 = jnp.dot(xd, w1.astype(compute_dtype), preferred_element_type=jnp.float32) + b1
    h1 = jnp.maximum(h1, 0.0).astype(compute_dtype)
    h2 = jnp.dot(h1, w2.astype(compute_dtype), preferred_element_type=jnp.float32) + b2
    h2 = jnp.maximum(h2, 0.0).astype(compute_dtype)
    logits = jnp.dot(h2, w3.astype(compute_dtype), preferred_element_type=jnp.float32) + b3
    return jax.nn.sigmoid(logits)


def mlp_reference_f32(x, w1, b1, w2, b2, w3, b3):
    h1 = jnp.maximum(x @ w1 + b1, 0.0)
    h2 = jnp.maximum(h1 @ w2 + b2, 0.0)
    return jax.nn.sigmoid(h2 @ w3 + b3)


def init_linear(key, fan_in, fan_out):
    """Deterministic init matching nn.Linear's default U(-1/sqrt(fan_in), +...)."""
    kw, kb = jax.random.split(key)
    bound = 1.0 / jnp.sqrt(jnp.float32(fan_in))
    # stored as (in_features, out_features) — transposed vs. PyTorch's (out, in)
    w = jax.random.uniform(kw, (fan_in, fan_out), jnp.float32, -bound, bound)
    b = jax.random.uniform(kb, (1, fan_out), jnp.float32, -bound, bound)
    return w, b


if __name__ == "__main__":
    input_size = 32
    hidden_size = 32

    root = jax.random.PRNGKey(0)
    kx, k1, k2, k3, kx2, kx3 = jax.random.split(root, 6)

    w1, b1 = init_linear(k1, input_size, hidden_size)
    w2, b2 = init_linear(k2, hidden_size, hidden_size)
    w3, b3 = init_linear(k3, hidden_size, 1)

    # --- small-batch case (matches the module's typical usage) ---------------
    batch = 8
    x = jax.random.normal(kx, (batch, input_size), jnp.float32)
    out = jax.block_until_ready(mlp_forward(x, w1, b1, w2, b2, w3, b3))
    assert out.shape == (batch, 1)
    assert jnp.allclose(out, mlp_reference_bf16(x, w1, b1, w2, b2, w3, b3),
                        atol=1e-3, rtol=1e-3)
    assert jnp.allclose(out, mlp_reference_f32(x, w1, b1, w2, b2, w3, b3),
                        atol=2e-2, rtol=2e-2)

    # --- medium batch: single large tile, exact fit ---------------------------
    batch2 = 640
    x2 = jax.random.normal(kx2, (batch2, input_size), jnp.float32)
    out2 = jax.block_until_ready(mlp_forward(x2, w1, b1, w2, b2, w3, b3))
    assert out2.shape == (batch2, 1)
    assert jnp.allclose(out2, mlp_reference_bf16(x2, w1, b1, w2, b2, w3, b3),
                        atol=1e-3, rtol=1e-3)
    assert jnp.allclose(out2, mlp_reference_f32(x2, w1, b1, w2, b2, w3, b3),
                        atol=2e-2, rtol=2e-2)

    # --- large ragged batch: 2 parallel tiles + masked partial last block -----
    batch3 = 1037
    x3 = jax.random.normal(kx3, (batch3, input_size), jnp.float32)
    out3 = jax.block_until_ready(mlp_forward(x3, w1, b1, w2, b2, w3, b3))
    assert out3.shape == (batch3, 1)
    assert jnp.allclose(out3, mlp_reference_bf16(x3, w1, b1, w2, b2, w3, b3),
                        atol=1e-3, rtol=1e-3)
    assert jnp.allclose(out3, mlp_reference_f32(x3, w1, b1, w2, b2, w3, b3),
                        atol=2e-2, rtol=2e-2)

    print("KERNEL_OK")
</pallas_src>

<mosaic_0001>
module attributes {stable_mosaic.version = 11 : i64} {
  func.func @mlp_kernel(%arg0: i32, %arg1: memref<8x32xf32, #tpu.memory_space<vmem>>, %arg2: memref<32x32xbf16, #tpu.memory_space<vmem>>, %arg3: memref<1x32xf32, #tpu.memory_space<vmem>>, %arg4: memref<32x32xbf16, #tpu.memory_space<vmem>>, %arg5: memref<1x32xf32, #tpu.memory_space<vmem>>, %arg6: memref<32x128xbf16, #tpu.memory_space<vmem>>, %arg7: memref<1x1xf32, #tpu.memory_space<vmem>>, %arg8: memref<8x1xf32, #tpu.memory_space<vmem>>) attributes {dimension_semantics = [#tpu.dimension_semantics<parallel>], iteration_bounds = array<i64: 1>, scalar_prefetch = 0 : i64, scratch_operands = 0 : i64, tpu.core_type = #tpu.core_type<tc>, window_params = [{transform_indices = @transform_0, window_bounds = array<i64: 8, 32>}, {pipeline_mode = #tpu.pipeline_mode<synchronous>, transform_indices = @transform_1, window_bounds = array<i64: 32, 32>}, {pipeline_mode = #tpu.pipeline_mode<synchronous>, transform_indices = @transform_2, window_bounds = array<i64: 1, 32>}, {pipeline_mode = #tpu.pipeline_mode<synchronous>, transform_indices = @transform_3, window_bounds = array<i64: 32, 32>}, {pipeline_mode = #tpu.pipeline_mode<synchronous>, transform_indices = @transform_4, window_bounds = array<i64: 1, 32>}, {pipeline_mode = #tpu.pipeline_mode<synchronous>, transform_indices = @transform_5, window_bounds = array<i64: 32, 128>}, {pipeline_mode = #tpu.pipeline_mode<synchronous>, transform_indices = @transform_6, window_bounds = array<i64: 1, 1>}, {transform_indices = @transform_7, window_bounds = array<i64: 8, 1>}]} {
    %c0 = arith.constant 0 : index
    %c0_0 = arith.constant 0 : index
    %0 = vector.load %arg1[%c0, %c0_0] : memref<8x32xf32, #tpu.memory_space<vmem>>, vector<8x32xf32>
    %1 = arith.truncf %0 : vector<8x32xf32> to vector<8x32xbf16>
    %c0_1 = arith.constant 0 : index
    %c0_2 = arith.constant 0 : index
    %2 = vector.load %arg2[%c0_1, %c0_2] : memref<32x32xbf16, #tpu.memory_space<vmem>>, vector<32x32xbf16>
    %cst = arith.constant dense<0.000000e+00> : vector<8x32xf32>
    %3 = tpu.matmul %1, %2, %cst {dimension_numbers = #tpu.dot_dimension_numbers<[1], [0], [0], [1], [0, 0, 1, 1], [], []>} : vector<8x32xbf16>, vector<32x32xbf16>, vector<8x32xf32> -> vector<8x32xf32>
    %c0_3 = arith.constant 0 : index
    %c0_4 = arith.constant 0 : index
    %4 = vector.load %arg3[%c0_3, %c0_4] : memref<1x32xf32, #tpu.memory_space<vmem>>, vector<1x32xf32>
    %5 = vector.broadcast %4 : vector<1x32xf32> to vector<8x32xf32>
    %6 = arith.addf %3, %5 : vector<8x32xf32>
    %cst_5 = arith.constant 0.000000e+00 : f32
    %7 = vector.broadcast %cst_5 : f32 to vector<8x32xf32>
    %8 = arith.maximumf %6, %7 : vector<8x32xf32>
    %9 = arith.truncf %8 : vector<8x32xf32> to vector<8x32xbf16>
    %c0_6 = arith.constant 0 : index
    %c0_7 = arith.constant 0 : index
    %10 = vector.load %arg4[%c0_6, %c0_7] : memref<32x32xbf16, #tpu.memory_space<vmem>>, vector<32x32xbf16>
    %cst_8 = arith.constant dense<0.000000e+00> : vector<8x32xf32>
    %11 = tpu.matmul %9, %10, %cst_8 {dimension_numbers = #tpu.dot_dimension_numbers<[1], [0], [0], [1], [0, 0, 1, 1], [], []>} : vector<8x32xbf16>, vector<32x32xbf16>, vector<8x32xf32> -> vector<8x32xf32>
    %c0_9 = arith.constant 0 : index
    %c0_10 = arith.constant 0 : index
    %12 = vector.load %arg5[%c0_9, %c0_10] : memref<1x32xf32, #tpu.memory_space<vmem>>, vector<1x32xf32>
    %13 = vector.broadcast %12 : vector<1x32xf32> to vector<8x32xf32>
    %14 = arith.addf %11, %13 : vector<8x32xf32>
    %cst_11 = arith.constant 0.000000e+00 : f32
    %15 = vector.broadcast %cst_11 : f32 to vector<8x32xf32>
    %16 = arith.maximumf %14, %15 : vector<8x32xf32>
    %17 = arith.truncf %16 : vector<8x32xf32> to vector<8x32xbf16>
    %c0_12 = arith.constant 0 : index
    %c0_13 = arith.constant 0 : index
    %18 = vector.load %arg6[%c0_12, %c0_13] : memref<32x128xbf16, #tpu.memory_space<vmem>>, vector<32x128xbf16>
    %cst_14 = arith.constant dense<0.000000e+00> : vector<8x128xf32>
    %19 = tpu.matmul %17, %18, %cst_14 {dimension_numbers = #tpu.dot_dimension_numbers<[1], [0], [0], [1], [0, 0, 1, 1], [], []>} : vector<8x32xbf16>, vector<32x128xbf16>, vector<8x128xf32> -> vector<8x128xf32>
    %20 = vector.extract_strided_slice %19 {offsets = [0, 0], sizes = [8, 1], strides = [1, 1]} : vector<8x128xf32> to vector<8x1xf32>
    %c0_15 = arith.constant 0 : index
    %c0_16 = arith.constant 0 : index
    %21 = vector.load %arg7[%c0_15, %c0_16] : memref<1x1xf32, #tpu.memory_space<vmem>>, vector<1x1xf32>
    %22 = vector.broadcast %21 : vector<1x1xf32> to vector<8x1xf32>
    %23 = arith.addf %20, %22 : vector<8x1xf32>
    %24 = arith.negf %23 : vector<8x1xf32>
    %25 = math.exp %24 : vector<8x1xf32>
    %cst_17 = arith.constant 1.000000e+00 : f32
    %26 = vector.broadcast %cst_17 : f32 to vector<8x1xf32>
    %27 = arith.addf %26, %25 : vector<8x1xf32>
    %28 = arith.divf %26, %27 : vector<8x1xf32>
    %c0_18 = arith.constant 0 : index
    %c0_19 = arith.constant 0 : index
    %29 = vector.load %arg8[%c0_18, %c0_19] : memref<8x1xf32, #tpu.memory_space<vmem>>, vector<8x1xf32>
    tpu.vector_store %arg8[%c0_18, %c0_19], %28 {strides = array<i32>} : memref<8x1xf32, #tpu.memory_space<vmem>>, vector<8x1xf32>,
    return
  }
  func.func @transform_0(%arg0: i32) -> (i32, i32) {
    %c0_i32 = arith.constant 0 : i32
    %c0_i32_0 = arith.constant 0 : i32
    return %arg0, %c0_i32 : i32, i32
  }
  func.func @transform_1(%arg0: i32) -> (i32, i32) {
    %c0_i32 = arith.constant 0 : i32
    %c0_i32_0 = arith.constant 0 : i32
    %c0_i32_1 = arith.constant 0 : i32
    return %c0_i32, %c0_i32_0 : i32, i32
  }
  func.func @transform_2(%arg0: i32) -> (i32, i32) {
    %c0_i32 = arith.constant 0 : i32
    %c0_i32_0 = arith.constant 0 : i32
    %c0_i32_1 = arith.constant 0 : i32
    return %c0_i32, %c0_i32_0 : i32, i32
  }
  func.func @transform_3(%arg0: i32) -> (i32, i32) {
    %c0_i32 = arith.constant 0 : i32
    %c0_i32_0 = arith.constant 0 : i32
    %c0_i32_1 = arith.constant 0 : i32
    return %c0_i32, %c0_i32_0 : i32, i32
  }
  func.func @transform_4(%arg0: i32) -> (i32, i32) {
    %c0_i32 = arith.constant 0 : i32
    %c0_i32_0 = arith.constant 0 : i32
    %c0_i32_1 = arith.constant 0 : i32
    return %c0_i32, %c0_i32_0 : i32, i32
  }
  func.func @transform_5(%arg0: i32) -> (i32, i32) {
    %c0_i32 = arith.constant 0 : i32
    %c0_i32_0 = arith.constant 0 : i32
    %c0_i32_1 = arith.constant 0 : i32
    return %c0_i32, %c0_i32_0 : i32, i32
  }
  func.func @transform_6(%arg0: i32) -> (i32, i32) {
    %c0_i32 = arith.constant 0 : i32
    %c0_i32_0 = arith.constant 0 : i32
    %c0_i32_1 = arith.constant 0 : i32
    return %c0_i32, %c0_i32_0 : i32, i32
  }
  func.func @transform_7(%arg0: i32) -> (i32, i32) {
    %c0_i32 = arith.constant 0 : i32
    %c0_i32_0 = arith.constant 0 : i32
    return %arg0, %c0_i32 : i32, i32
  }
}

</mosaic_0001>

<bundles_post_ra>
// kernel: tpu_custom_call.1
= control target key start
LH: loop header
LB: loop body
LE: loop exit
PB: predicated region body
PF: predicated region fallthrough
CT: control target
= control target key end

     0   :  { %s531_s0 = inlined_call_operand.hbm [shape: f32[8,32], index: 0, kind: input, shape index: {}]   ;;  %s532_s1 = inlined_call_operand.hbm [shape: bf16[32,32], index: 1, kind: input, shape index: {}]   ;;  %s533_s2 = inlined_call_operand.vmem [shape: f32[1,32], index: 2, kind: input, shape index: {}]   ;;  %s534_s3 = inlined_call_operand.hbm [shape: bf16[32,32], index: 3, kind: input, shape index: {}]   ;;  %s535_s4 = inlined_call_operand.vmem [shape: f32[1,32], index: 4, kind: input, shape index: {}]   ;;  %s536_s5 = inlined_call_operand.vmem [shape: bf16[32,128], index: 5, kind: input, shape index: {}]   ;;  %s537_s6 = inlined_call_operand.<no memory space> [shape: f32[1,1], index: 6, kind: input, shape index: {}]   ;;  %s538_s7 = inlined_call_operand.vmem [shape: f32[8,1], index: 7, kind: output, shape index: {}]  }
   0x1   :  { %v12_v0 = vstv %s537_s6 }
   0x2   :  { %13 = vst [vmem:[#allocation2] sm:$0x1] %v12_v0 }
   0x3   :  { %14 = vsyncpa [#allocation4], 0 }
   0x4   :  { %15 = vsyncpa [#allocation6], 0  ;;  %s421_s26 = smov [#allocation5]   ;;  %s351_s30 = scalar_lea.hbm %s532_s1, 256 }
   0x5   :  { %s31_s27 = sshll.u32 %s421_s26, 4  ;;  %p352_p0 = scmp.ne.s32.totalorder %s532_s1, %s351_s30  ;;  %s32_s27 = int_to_ptr.vmem [resolvable:$true] %s31_s27 }
   0x6   :  { %p355_p1 = scmp.lt.u32.totalorder %s351_s30, %s532_s1 }
   0x8   :  { %p357_p2 = pnand %p355_p1, %p352_p0 }
   0xa   :  { %360 = shalt.err (!%p357_p2)
}
   0xb   :  { %s361_s6 = scalar_lea.vmem %s32_s27, 256  ;;  %p366_p4 = scmp.lt.s32.totalorder %s32_s27, %s32_s27 }
   0xc   :  { %p362_p3 = scmp.ne.s32.totalorder %s32_s27, %s361_s6  ;;  %p367_p5 = scmp.lt.s32.totalorder %s361_s6, %s361_s6 }
   0xe   :  { %p368_p6 = por %p367_p5, %p366_p4 }
  0x10   :  { %p369_p7 = pnand %p368_p6, %p362_p3 }
  0x12   :  { %372 = shalt.err (!%p369_p7)
}
  0x13   :  { %s422_s12 = smov 64   ;;  %s423_s13 = smov 4  }
  0x14   :  { %37 = dma.hbm_to_vmem [thread:$0]  %s532_s1, 256, %s32_s27, [#allocation6], %s422_s12, %s422_s12, %s423_s13  }
  0x15   :  { %s424_s16 = smov [#allocation3]   ;;  %s425_s18 = smov [#allocation7]  }
  0x16   :  { %s22_s17 = sshll.u32 %s424_s16, 4  ;;  %s45_s19 = sshll.u32 %s425_s18, 4  ;;  %s23_s17 = int_to_ptr.vmem [resolvable:$true] %s22_s17  ;;  %s46_s19 = int_to_ptr.vmem [resolvable:$true] %s45_s19 }
  0x17   :  { %s373_s22 = scalar_lea.hbm %s531_s0, 128 }
  0x18   :  { %p374_p8 = scmp.ne.s32.totalorder %s531_s0, %s373_s22  ;;  %p377_p9 = scmp.lt.u32.totalorder %s373_s22, %s531_s0 }
  0x1a   :  { %p379_p10 = pnand %p377_p9, %p374_p8 }
  0x1c   :  { %382 = shalt.err (!%p379_p10)
}
  0x1d   :  { %s383_s1 = scalar_lea.vmem %s23_s17, 128  ;;  %p388_p12 = scmp.lt.s32.totalorder %s23_s17, %s23_s17 }
  0x1e   :  { %p384_p11 = scmp.ne.s32.totalorder %s23_s17, %s383_s1  ;;  %p389_p13 = scmp.lt.s32.totalorder %s383_s1, %s383_s1 }
  0x20   :  { %p390_p0 = por %p389_p13, %p388_p12 }
  0x22   :  { %p391_p1 = pnand %p390_p0, %p384_p11 }
  0x24   :  { %394 = shalt.err (!%p391_p1)
}
  0x25   :  { %25 = dma.hbm_to_vmem [thread:$0]  %s531_s0, 128, %s23_s17, [#allocation4]  }
  0x26   :  { %s395_s8 = scalar_lea.hbm %s534_s3, 256 }
  0x27   :  { %p396_p2 = scmp.ne.s32.totalorder %s534_s3, %s395_s8  ;;  %p399_p3 = scmp.lt.u32.totalorder %s395_s8, %s534_s3 }
  0x29   :  { %p401_p4 = pnand %p399_p3, %p396_p2 }
  0x2b   :  { %404 = shalt.err (!%p401_p4)
}
  0x2c   :  { %s405_s14 = scalar_lea.vmem %s46_s19, 256  ;;  %p410_p6 = scmp.lt.s32.totalorder %s46_s19, %s46_s19 }
  0x2d   :  { %p406_p5 = scmp.ne.s32.totalorder %s46_s19, %s405_s14  ;;  %p411_p7 = scmp.lt.s32.totalorder %s405_s14, %s405_s14 }
  0x2f   :  { %p412_p8 = por %p411_p7, %p410_p6 }
  0x31   :  { %p413_p9 = pnand %p412_p8, %p406_p5 }
  0x33   :  { %416 = shalt.err (!%p413_p9)
}
  0x34   :  { %51 = dma.hbm_to_vmem [thread:$0]  %s534_s3, 256, %s46_s19, [#allocation6], %s422_s12, %s422_s12, %s423_s13  }
  0x35   :  { %417 = dma.done.wait [#allocation4], 128  }
  0x36   :  { %418 = vsyncadd [#allocation4], 4294967168 }
  0x37   :  { %419 = dma.done.wait [#allocation6], 512  }
  0x38   :  { %420 = vsyncadd [#allocation6], 4294966784  ;;  %v426_v1 = vmov 0.0   ;;  %vm427_vm0 = vmmov 0   ;;  %v341_v2 = vld [vmem:[#allocation5] sm:$0xff]   ;;  %v342_v3 = vld [vmem:[#allocation5 + $0x8] sm:$0xff]  }
  0x39   :  { %310 = vmatprep.subr.bf16.mxu0 %v426_v1  ;;  %314 = vmatprep.mubr.msk.bf16.mxu0 %vm427_vm0, %v426_v1  ;;  %v68_v4 = vld [vmem:[#allocation3] sm:$0xff]  ;;  %vm93_vm1 = vcmask 261120   ;;  %v343_v6 = vld [vmem:[#allocation7] sm:$0xff]   ;;  %vm280_vm2 = vcmask 7168  }
  0x3a   :  { %318 = vmatprep.subr.bf16.mxu1 %v426_v1  ;;  %322 = vmatprep.mubr.msk.bf16.mxu1 %vm427_vm0, %v426_v1  ;;  %v69_v5 = vpack.c.bf16 %v68_v4, %v68_v4  ;;  %v344_v7 = vld [vmem:[#allocation7 + $0x8] sm:$0xff]   ;;  %v288_v9 = vld [vmem:[%s533_s2] ss:$0 sm:$0xff] }
  0x3b   :  { %311 = vmatpush3.bf16.msra.mxu0 %v341_v2  ;;  %319 = vmatpush3.bf16.msra.mxu1 %v343_v6  ;;  %v345_v8 = vld [vmem:[%s536_s5] sm:$0xff]   ;;  %v346_v17 = vld [vmem:[%s536_s5 + $0x8] sm:$0xff]  }
  0x3c   :  { %312 = vmatprep.subr.bf16.mxu0 %v426_v1  ;;  %320 = vmatprep.subr.bf16.mxu1 %v426_v1  ;;  %v292_v18 = vld [vmem:[%s535_s4] ss:$0 sm:$0xff] }
  0x3d   :  { %v299_v26 = vld [vmem:[#allocation2] ss:$0 sm:$0xff] }
  0x3f   :  { %313 = vmatpush3.bf16.msra.mxu0 %v342_v3  ;;  %321 = vmatpush3.bf16.msra.mxu1 %v344_v7 }
  0x40   :  { %326 = vmatprep.subr.bf16.mxu0 %v426_v1 }
  0x42   :  { %315 = vmatmul.mubr.msk.bf16.vlgmr.msra.gmra.mrb[0].mxu0 %vm93_vm1, %v69_v5 }
  0x43   :  { %330 = vmatprep.mubr.msk.bf16.mxu0 %vm427_vm0, %v426_v1  ;;  %327 = vmatpush3.bf16.msra.mxu0 %v345_v8 }
  0x44   :  { %328 = vmatprep.subr.bf16.mxu0 %v426_v1 }
  0x47   :  { %329 = vmatpush3.bf16.msra.mxu0 %v346_v17 }
 0x115   :  { %v131_v10 = vpop.f32.mrb[0].mxu0 }
 0x116   :  { %v132_v11 = vadd.f32 %v288_v9, %v131_v10  ;;  %v316_v12 = vpop.f32.mrb[1].mxu0 }
 0x117   :  { %v134_v13 = vpop.f32.mrb[2].mxu0 }
 0x118   :  { %v137_v14 = vmax.f32 %v132_v11, 0.0  ;;  %v317_v15 = vpop.f32.mrb[3].mxu0 }
 0x11a   :  { %v138_v16 = vpack.c.bf16 %v137_v14, %v137_v14 }
 0x11c   :  { %323 = vmatmul.mubr.msk.bf16.vlgmr.msra.gmra.mrb[0].mxu1 %vm93_vm1, %v138_v16 }
 0x1ef   :  { %v199_v19 = vpop.f32.mrb[0].mxu1 }
 0x1f0   :  { %v200_v20 = vadd.f32 %v292_v18, %v199_v19  ;;  %v324_v21 = vpop.f32.mrb[1].mxu1 }
 0x1f1   :  { %v202_v22 = vpop.f32.mrb[2].mxu1 }
 0x1f2   :  { %v205_v23 = vmax.f32 %v200_v20, 0.0  ;;  %v325_v24 = vpop.f32.mrb[3].mxu1 }
 0x1f4   :  { %v206_v25 = vpack.c.bf16 %v205_v23, %v205_v23 }
 0x1f6   :  { %331 = vmatmul.mubr.msk.bf16.vlgmr.msra.gmra.mrb[4].mxu0 %vm93_vm1, %v206_v25 }
 0x2c9   :  { %v260_v27 = vpop.f32.mrb[4].mxu0 }
 0x2ca   :  { %v273_v28 = vadd.f32 %v299_v26, %v260_v27  ;;  %v332_v29 = vpop.f32.mrb[5].mxu0 }
 0x2cb   :  { %v263_v30 = vpop.f32.mrb[6].mxu0 }
 0x2cc   :  { %v300_v31 = vmul.f32 -1.442695, %v273_v28  ;;  %v333_v32 = vpop.f32.mrb[7].mxu0 }
 0x2ce   :  { %347 = vpow2.f32 %v300_v31 }
 0x2d8   :  { %v348_v33 = vpop.eup %347 }
 0x2d9   :  { %v277_v34 = vadd.f32 1.0, %v348_v33 }
 0x2db   :  { %349 = vrcp.f32 %v277_v34 }
 0x2e5   :  { %v350_v35 = vpop.eup %349 }
 0x2e6   :  { %281 = vst.msk [vmem:[%s538_s7] sm:$0xff] %vm280_vm2, %v350_v35 }
 0x2e7   :  { %286 = vsyncpa [#allocation4], 1 }
 0x2e8   :  { %287 = vsyncpa [#allocation6], 1 }

</bundles_post_ra>
